<compile_context>
chip_gen: v6e
topology: v6e:2x2x1
jax: 0.10.0
libtpu: 0.0.40
codegen_flags: <defaults>
</compile_context>

<pallas_src>
import jax
import jax.numpy as jnp
from jax.experimental import pallas as pl
from jax.experimental.pallas import tpu as pltpu

LANE_TILE = 512            # batch-lane alignment per grid step (multiple of 128)
MAX_TILE_B = 64 * 1024     # lane cap per grid step -> <= 8 MiB pipelined VMEM


def _linear_t_kernel(xt_ref, w_ref, b_ref, ot_ref):
    """One lane-dense tile:  y^T = W @ x^T + b   (single MXU dot, single store).

    xt_ref: (in_f, tile_b)   VMEM, batch on the 128-lane axis
    w_ref:  (out_f, in_f)    VMEM (PyTorch layout, used as-is)
    b_ref:  (out_f, 1)       VMEM (broadcast over lanes)
    ot_ref: (out_f, tile_b)  VMEM
    """
    y = jnp.dot(w_ref[...], xt_ref[...], preferred_element_type=jnp.float32)
    ot_ref[...] = (y + b_ref[...]).astype(ot_ref.dtype)


def _choose_tile_b(batch: int) -> int:
    """Adaptive lane tile: big enough to amortize per-step overhead, small
    enough to fit every generation's VMEM and (for big batches) to give the
    'parallel' grid axis >= 2 steps for v7x's two TensorCores."""
    b_aligned = pl.cdiv(batch, LANE_TILE) * LANE_TILE
    if b_aligned >= 2 * 8192:
        tile = pl.cdiv(b_aligned, 2 * LANE_TILE) * LANE_TILE   # ~half the batch
    else:
        tile = b_aligned                                       # one step, no waste
    return min(tile, MAX_TILE_B)


def _linear_feature_major(xt, weight, bias_col, tile_b):
    """Core kernel on feature-major activations: xt (in_f, Bp) -> y^T (out_f, Bp).

    Callers that keep activations in (features, batch) layout end-to-end can use
    this directly and avoid the wrapper transposes entirely."""
    in_f, b_pad = xt.shape
    out_f = weight.shape[0]
    grid = (b_pad // tile_b,)

    return pl.pallas_call(
        _linear_t_kernel,
        out_shape=jax.ShapeDtypeStruct((out_f, b_pad), xt.dtype),
        grid_spec=pltpu.PrefetchScalarGridSpec(
            num_scalar_prefetch=0,
            grid=grid,
            in_specs=[
                # x^T: full in_f rows (== array extent), one lane-dense batch
                # tile per grid step (auto double-buffered).
                pl.BlockSpec((in_f, tile_b), lambda i: (0, i)),
                # Weight and bias: tiny, VMEM-resident, same block every step.
                pl.BlockSpec((out_f, in_f), lambda i: (0, 0)),
                pl.BlockSpec((out_f, 1), lambda i: (0, 0)),
            ],
            out_specs=pl.BlockSpec((out_f, tile_b), lambda i: (0, i)),
        ),
        compiler_params=pltpu.CompilerParams(
            dimension_semantics=("parallel",),
            vmem_limit_bytes=32 * 1024 * 1024,
        ),
    )(xt, weight, bias_col)


def linear_pallas(x, weight, bias):
    """y = x @ weight.T + bias, matching torch.nn.Linear semantics.

    x:      (B, in_features)            float32
    weight: (out_features, in_features) float32  (PyTorch layout, used as-is)
    bias:   (out_features,)             float32
    """
    B, in_f = x.shape
    out_f = weight.shape[0]

    tile_b = _choose_tile_b(B)
    b_pad = pl.cdiv(B, tile_b) * tile_b

    x_p = x if b_pad == B else jnp.pad(x, ((0, b_pad - B), (0, 0)))
    xt = x_p.T                                   # (in_f, b_pad), batch on lanes
    yt = _linear_feature_major(xt, weight, bias.reshape(out_f, 1), tile_b)
    return yt[:, :B].T                           # back to PyTorch (B, out_f)


class SoftmaxClassifierModel:
    """JAX/Pallas port of the PyTorch module: forward(x) = Linear(3, 3)(x)."""

    def __init__(self, key):
        in_f, out_f = 3, 3
        k_w, k_b = jax.random.split(key)
        # Deterministic init mimicking nn.Linear default: U(-1/sqrt(in), 1/sqrt(in)).
        bound = 1.0 / jnp.sqrt(jnp.float32(in_f))
        # Kept in PyTorch (out_f, in_f) layout — the y^T = W @ x^T formulation
        # needs no per-call weight transpose.
        self.weight = jax.random.uniform(
            k_w, (out_f, in_f), jnp.float32, minval=-bound, maxval=bound)
        self.bias = jax.random.uniform(
            k_b, (out_f,), jnp.float32, minval=-bound, maxval=bound)
        # jit so pad/transpose glue fuses with the pallas_call dispatch.
        self._fwd = jax.jit(linear_pallas)

    def __call__(self, x):
        return self._fwd(x, self.weight, self.bias)


if __name__ == "__main__":
    key = jax.random.PRNGKey(0)
    k_model, k_x1, k_x2 = jax.random.split(key, 3)

    model = SoftmaxClassifierModel(k_model)

    # Case 1: batch of 256 (single 512-wide tile, exercises padding to lane tile).
    batch1 = 256
    x1 = jax.random.normal(k_x1, (batch1, 3), dtype=jnp.float32)
    y1 = model(x1)
    jax.block_until_ready(y1)
    y1_ref = x1 @ model.weight.T + model.bias
    assert y1.shape == (batch1, 3)
    assert jnp.allclose(y1, y1_ref, atol=1e-5), "mismatch vs reference (B=256)"

    # Case 2: tiny batch exercising the small-B padding path.
    batch2 = 8
    x2 = jax.random.normal(k_x2, (batch2, 3), dtype=jnp.float32)
    y2 = model(x2)
    jax.block_until_ready(y2)
    y2_ref = x2 @ model.weight.T + model.bias
    assert y2.shape == (batch2, 3)
    assert jnp.allclose(y2, y2_ref, atol=1e-5), "mismatch vs reference (B=8)"

    print("KERNEL_OK")
</pallas_src>

<mosaic_0001>
module attributes {stable_mosaic.version = 11 : i64} {
  func.func @_linear_t_kernel(%arg0: i32, %arg1: memref<3x512xf32, #tpu.memory_space<vmem>>, %arg2: memref<3x3xf32, #tpu.memory_space<vmem>>, %arg3: memref<3x1xf32, #tpu.memory_space<vmem>>, %arg4: memref<3x512xf32, #tpu.memory_space<vmem>>) attributes {dimension_semantics = [#tpu.dimension_semantics<parallel>], iteration_bounds = array<i64: 1>, scalar_prefetch = 0 : i64, scratch_operands = 0 : i64, tpu.core_type = #tpu.core_type<tc>, window_params = [{transform_indices = @transform_0, window_bounds = array<i64: 3, 512>}, {pipeline_mode = #tpu.pipeline_mode<synchronous>, transform_indices = @transform_1, window_bounds = array<i64: 3, 3>}, {pipeline_mode = #tpu.pipeline_mode<synchronous>, transform_indices = @transform_2, window_bounds = array<i64: 3, 1>}, {transform_indices = @transform_3, window_bounds = array<i64: 3, 512>}]} {
    %c0 = arith.constant 0 : index
    %c0_0 = arith.constant 0 : index
    %0 = vector.load %arg2[%c0, %c0_0] : memref<3x3xf32, #tpu.memory_space<vmem>>, vector<3x3xf32>
    %c0_1 = arith.constant 0 : index
    %c0_2 = arith.constant 0 : index
    %1 = vector.load %arg1[%c0_1, %c0_2] : memref<3x512xf32, #tpu.memory_space<vmem>>, vector<3x512xf32>
    %cst = arith.constant dense<0.000000e+00> : vector<3x512xf32>
    %2 = tpu.matmul %0, %1, %cst {dimension_numbers = #tpu.dot_dimension_numbers<[1], [0], [0], [1], [0, 0, 1, 1], [], []>} : vector<3x3xf32>, vector<3x512xf32>, vector<3x512xf32> -> vector<3x512xf32>
    %c0_3 = arith.constant 0 : index
    %c0_4 = arith.constant 0 : index
    %3 = vector.load %arg3[%c0_3, %c0_4] : memref<3x1xf32, #tpu.memory_space<vmem>>, vector<3x1xf32>
    %4 = vector.broadcast %3 : vector<3x1xf32> to vector<3x512xf32>
    %5 = arith.addf %2, %4 : vector<3x512xf32>
    %c0_5 = arith.constant 0 : index
    %c0_6 = arith.constant 0 : index
    %6 = vector.load %arg4[%c0_5, %c0_6] : memref<3x512xf32, #tpu.memory_space<vmem>>, vector<3x512xf32>
    tpu.vector_store %arg4[%c0_5, %c0_6], %5 {strides = array<i32>} : memref<3x512xf32, #tpu.memory_space<vmem>>, vector<3x512xf32>,
    return
  }
  func.func @transform_0(%arg0: i32) -> (i32, i32) {
    %c0_i32 = arith.constant 0 : i32
    %c0_i32_0 = arith.constant 0 : i32
    return %c0_i32, %arg0 : i32, i32
  }
  func.func @transform_1(%arg0: i32) -> (i32, i32) {
    %c0_i32 = arith.constant 0 : i32
    %c0_i32_0 = arith.constant 0 : i32
    %c0_i32_1 = arith.constant 0 : i32
    return %c0_i32, %c0_i32_0 : i32, i32
  }
  func.func @transform_2(%arg0: i32) -> (i32, i32) {
    %c0_i32 = arith.constant 0 : i32
    %c0_i32_0 = arith.constant 0 : i32
    %c0_i32_1 = arith.constant 0 : i32
    return %c0_i32, %c0_i32_0 : i32, i32
  }
  func.func @transform_3(%arg0: i32) -> (i32, i32) {
    %c0_i32 = arith.constant 0 : i32
    %c0_i32_0 = arith.constant 0 : i32
    return %c0_i32, %arg0 : i32, i32
  }
}

</mosaic_0001>

<bundles_post_ra>
// kernel: linear_pallas.1
= control target key start
LH: loop header
LB: loop body
LE: loop exit
PB: predicated region body
PF: predicated region fallthrough
CT: control target
= control target key end

     0   :  { %vm31_vm0 = vcmask 1042432   ;;  %v207_v2 = vmov 0.0   ;;  %v208_v5 = vmov 0   ;;  %vm27_vm1 = vcmask 23552   ;;  %s251_s0 = inlined_call_operand.vmem [shape: f32[3,512], index: 0, kind: input, shape index: {}]   ;;  %s252_s1 = inlined_call_operand.vmem [shape: f32[3,3], index: 1, kind: input, shape index: {}]   ;;  %s253_s2 = inlined_call_operand.vmem [shape: f32[3,1], index: 2, kind: input, shape index: {}]   ;;  %s254_s3 = inlined_call_operand.vmem [shape: f32[3,512], index: 3, kind: output, shape index: {}]  }
   0x1   :  { %v15_v0 = vld [vmem:[%s251_s0] sm:$0x77]  ;;  %v16_v1 = vld [vmem:[%s251_s0 + $0x8] sm:$0x77]  ;;  %104 = vmatprep.mubr.f32.mxu0 %v207_v2  ;;  %175 = vmatprep.mubr.f32.mxu1 %v207_v2 }
   0x2   :  { %v25_v3 = vcombine.high %v15_v0, %v15_v0  ;;  %v26_v4 = vcombine.high %v16_v1, %v16_v1  ;;  %204 = vset.pattern.permute.xlu0 %v208_v5  ;;  %v17_v6 = vld [vmem:[%s253_s2] sm:$0x7] }
   0x3   :  { %v14_v7 = vld [vmem:[%s252_s1] sm:$0x7]  ;;  %20 = vperm.xlu0 %204, %v17_v6  }
   0x4   :  { %196 = vmatprep.subr.msk.mxu0 %vm31_vm0, %v25_v3  ;;  %199 = vmatprep.subr.msk.mxu1 %vm31_vm0, %v26_v4 }
   0x5   :  { %197 = vmatpush1.msk.msra.mxu0 %vm31_vm0, %v15_v0  ;;  %200 = vmatpush1.msk.msra.mxu1 %vm31_vm0, %v16_v1 }
   0x6   :  { %198 = vmatmul.mubr.msk.f32.vlgmr.msra.gmra.mxu0 %vm27_vm1, %v14_v7  ;;  %201 = vmatmul.mubr.msk.f32.vlgmr.msra.gmra.mxu1 %vm27_vm1, %v14_v7 }
  0x7e   :  { %v21_v8 = vpop.permute.xlu0 %20 }
  0xc6   :  { %v106_v9 = vpop.f32.mrf.mxu0  ;;  %v177_v10 = vpop.f32.mrf.mxu1 }
  0xc7   :  { %v107_v13 = vadd.f32 %v106_v9, %v21_v8  ;;  %v178_v14 = vadd.f32 %v177_v10, %v21_v8 }
  0xc8   :  { %v108_v11 = vpop.f32.mrf.mxu0  ;;  %v179_v12 = vpop.f32.mrf.mxu1 }
  0xc9   :  { %v109_v15 = vadd.f32 %v108_v11, %v21_v8  ;;  %v180_v16 = vadd.f32 %v179_v12, %v21_v8 }
  0xcb   :  { %v186_v17 = vcombine.low %v107_v13, %v109_v15  ;;  %v187_v18 = vcombine.low %v178_v14, %v180_v16 }
  0xcd   :  { %190 = vst [vmem:[%s254_s3] sm:$0x77] %v186_v17  ;;  %191 = vst [vmem:[%s254_s3 + $0x8] sm:$0x77] %v187_v18 }

</bundles_post_ra>
